<compile_context>
chip_gen: v5e
topology: v5e:2x2
jax: 0.10.0
libtpu: 0.0.40
codegen_flags: <defaults>
</compile_context>

<pallas_src>
from typing import NamedTuple

import jax
import jax.numpy as jnp
from jax.experimental import pallas as pl
from jax.experimental.pallas import tpu as pltpu

LANE = 128
SUBLANE_F32 = 8


# ----------------------------------------------------------------------------
# Kernel
# ----------------------------------------------------------------------------
def qselector_kernel(x_ref, w1_ref, b1_ref, w2_ref, b2_ref, o_ref):
    # Cast activations to the weights' dtype in-kernel (no extra HBM pass);
    # both dots accumulate in f32 on the MXU.
    x = x_ref[...].astype(w1_ref.dtype)
    h = jnp.dot(x, w1_ref[...], preferred_element_type=jnp.float32)
    h = jnp.maximum(h + b1_ref[...], 0.0)          # bias kept f32; ReLU(0)=0 on padded lanes
    q = jnp.dot(h.astype(w2_ref.dtype), w2_ref[...],
                preferred_element_type=jnp.float32)
    q = q + b2_ref[...]
    # Narrow writeback: only the true n_roles lanes go to HBM.
    o_ref[...] = q[:, : o_ref.shape[-1]].astype(o_ref.dtype)


# ----------------------------------------------------------------------------
# Parameter preparation (call ONCE at init time, not per forward)
# ----------------------------------------------------------------------------
class QSelectorParams(NamedTuple):
    w1: jax.Array     # (H, h2_pad)   fc1 weight, lane-padded
    b1: jax.Array     # (1, h2_pad)   fc1 bias, f32
    w2: jax.Array     # (h2_pad, n_pad) fc2 weight, lane-padded
    b2: jax.Array     # (1, n_pad)    fc2 bias, f32
    hidden2: int      # true (unpadded) fc1 output dim  -- cost estimate only
    n_roles: int      # true (unpadded) fc2 output dim


def _round_up(x, m):
    return ((x + m - 1) // m) * m


def _pad_axis(x, axis, target):
    pad = target - x.shape[axis]
    if pad <= 0:
        return x
    widths = [(0, 0)] * x.ndim
    widths[axis] = (0, pad)
    return jnp.pad(x, widths)


def prepare_qselector_params(w1, b1, w2, b2, *, compute_dtype=None):
    """Pad / reshape / cast parameters once.

    w1: (H, 2H), b1: (2H,) or (1, 2H), w2: (2H, n_roles), b2: (n_roles,) or (1, n_roles).
    compute_dtype=jnp.bfloat16 is recommended on v6e/v7x (native single-pass MXU,
    halved weight/activation operand bytes); accumulation stays f32 either way.
    """
    H, H2 = w1.shape
    n_roles = w2.shape[1]
    h2_p = max(LANE, _round_up(H2, LANE))
    n_p = max(LANE, _round_up(n_roles, LANE))

    w1p = _pad_axis(jnp.asarray(w1), 1, h2_p)
    w2p = _pad_axis(_pad_axis(jnp.asarray(w2), 0, h2_p), 1, n_p)
    # Biases stay f32: they are added after the f32 accumulation.
    b1p = _pad_axis(jnp.asarray(b1, jnp.float32).reshape(1, -1), 1, h2_p)
    b2p = _pad_axis(jnp.asarray(b2, jnp.float32).reshape(1, -1), 1, n_p)
    if compute_dtype is not None:
        w1p = w1p.astype(compute_dtype)
        w2p = w2p.astype(compute_dtype)
    return QSelectorParams(w1=w1p, b1=b1p, w2=w2p, b2=b2p,
                           hidden2=int(H2), n_roles=int(n_roles))


# ----------------------------------------------------------------------------
# Forward
# ----------------------------------------------------------------------------
def qselector_forward(inputs, params: QSelectorParams, role_latent=None, *,
                      tile_b=None, max_tile_b=2048):
    """role_q = relu(inputs @ w1 + b1) @ w2 + b2.  role_latent is unused (as in PyTorch)."""
    del role_latent  # unused by the forward pass, matching the PyTorch module

    out_dtype = inputs.dtype
    B, H = inputs.shape
    h2_p = params.w1.shape[1]
    n_p = params.w2.shape[1]
    n_roles = params.n_roles
    assert params.w1.shape[0] == H, "input feature dim mismatch with fc1"

    sub = 8 if jnp.dtype(inputs.dtype).itemsize >= 4 else 16
    if tile_b is None:
        # >=2 grid steps for nontrivial B (lets the "parallel" batch axis feed
        # both v7x TensorCores) while amortizing the ~0.35us/step overhead.
        # Capped at 2048 rows so double-buffered f32 tiles fit scoped VMEM
        # comfortably on every chip (v5e default 16 MiB, v6e/v7x 32 MiB).
        half = -(-B // 2)
        tile_b = max(sub, min(max_tile_b, _round_up(half, sub)))
    else:
        tile_b = max(sub, _round_up(tile_b, sub))

    grid = (pl.cdiv(B, tile_b),)  # ragged last block: Pallas masks OOB rows

    itemsize = jnp.dtype(out_dtype).itemsize
    w_bytes = sum(int(a.size) * jnp.dtype(a.dtype).itemsize
                  for a in (params.w1, params.b1, params.w2, params.b2))
    cost = pl.CostEstimate(
        flops=2 * B * (H * params.hidden2 + params.hidden2 * n_roles),
        transcendentals=0,
        bytes_accessed=B * H * itemsize + B * n_roles * itemsize + w_bytes,
    )

    return pl.pallas_call(
        qselector_kernel,
        out_shape=jax.ShapeDtypeStruct((B, n_roles), out_dtype),
        grid_spec=pltpu.PrefetchScalarGridSpec(
            num_scalar_prefetch=0,
            grid=grid,
            in_specs=[
                pl.BlockSpec((tile_b, H), lambda i: (i, 0)),    # input batch tile
                pl.BlockSpec((H, h2_p), lambda i: (0, 0)),      # fc1 weight (VMEM-resident)
                pl.BlockSpec((1, h2_p), lambda i: (0, 0)),      # fc1 bias (f32)
                pl.BlockSpec((h2_p, n_p), lambda i: (0, 0)),    # fc2 weight (VMEM-resident)
                pl.BlockSpec((1, n_p), lambda i: (0, 0)),       # fc2 bias (f32)
            ],
            out_specs=pl.BlockSpec((tile_b, n_roles), lambda i: (i, 0)),
        ),
        compiler_params=pltpu.CompilerParams(
            dimension_semantics=("parallel",),
            vmem_limit_bytes=32 * 1024 * 1024,
        ),
        cost_estimate=cost,
    )(inputs, params.w1, params.b1, params.w2, params.b2)


# ----------------------------------------------------------------------------
# Init helper (mimics torch.nn.Linear default init, weight transposed)
# ----------------------------------------------------------------------------
def init_linear_params(key, fan_in, fan_out, dtype=jnp.float32):
    kw, kb = jax.random.split(key)
    bound = 1.0 / jnp.sqrt(jnp.float32(fan_in))
    w = jax.random.uniform(kw, (fan_in, fan_out), dtype, -bound, bound)
    b = jax.random.uniform(kb, (1, fan_out), dtype, -bound, bound)
    return w, b


if __name__ == "__main__":
    rnn_hidden_dim = 32
    n_roles = 3
    batch = 8

    key = jax.random.PRNGKey(0)
    k_in, k_fc1, k_fc2, k_latent, k_big = jax.random.split(key, 5)

    inputs = jax.random.normal(k_in, (batch, rnn_hidden_dim), jnp.float32)
    role_latent = jax.random.normal(k_latent, (batch, rnn_hidden_dim), jnp.float32)  # unused

    w1, b1 = init_linear_params(k_fc1, rnn_hidden_dim, 2 * rnn_hidden_dim)
    w2, b2 = init_linear_params(k_fc2, 2 * rnn_hidden_dim, n_roles)

    # Pure-JAX reference.
    def ref_fn(x):
        return jnp.maximum(x @ w1 + b1, 0.0) @ w2 + b2

    # Pad / reshape weights ONCE (no per-call wrapper ops).
    params = prepare_qselector_params(w1, b1, w2, b2)

    # Small-batch check (single grid step).
    role_q = qselector_forward(inputs, params, role_latent)
    role_q = jax.block_until_ready(role_q)
    assert role_q.shape == (batch, n_roles)
    assert jnp.allclose(role_q, ref_fn(inputs), atol=1e-5, rtol=1e-5)

    # Ragged-batch / multi-step grid check (no wrapper batch pad; Pallas masks
    # the partial last block).
    big_batch = 40
    big_inputs = jax.random.normal(k_big, (big_batch, rnn_hidden_dim), jnp.float32)
    big_q = jax.block_until_ready(qselector_forward(big_inputs, params, tile_b=16))
    assert big_q.shape == (big_batch, n_roles)
    assert jnp.allclose(big_q, ref_fn(big_inputs), atol=1e-5, rtol=1e-5)

    # Default tile_b path (>=2 parallel grid steps for this batch).
    def_q = jax.block_until_ready(qselector_forward(big_inputs, params))
    assert jnp.allclose(def_q, ref_fn(big_inputs), atol=1e-5, rtol=1e-5)

    # bf16-operand path: weights pre-cast once, activations cast in-kernel,
    # f32 accumulation + f32 biases -> looser tolerance.
    params_bf16 = prepare_qselector_params(w1, b1, w2, b2, compute_dtype=jnp.bfloat16)
    bf_q = jax.block_until_ready(qselector_forward(big_inputs, params_bf16))
    assert bf_q.shape == (big_batch, n_roles)
    assert jnp.allclose(bf_q, ref_fn(big_inputs), atol=3e-2, rtol=3e-2)

    # TODO(synk): select_role / epsilon_schedule / update_roles are stateful
    # host-side epsilon-greedy sampling + module surgery, not part of the
    # tensor forward pass; not implemented as a kernel.
    print("KERNEL_OK")
</pallas_src>

<mosaic_0001>
module attributes {stable_mosaic.version = 11 : i64} {
  func.func @qselector_kernel(%arg0: i32, %arg1: memref<8x32xf32, #tpu.memory_space<vmem>>, %arg2: memref<32x128xf32, #tpu.memory_space<vmem>>, %arg3: memref<1x128xf32, #tpu.memory_space<vmem>>, %arg4: memref<128x128xf32, #tpu.memory_space<vmem>>, %arg5: memref<1x128xf32, #tpu.memory_space<vmem>>, %arg6: memref<8x3xf32, #tpu.memory_space<vmem>>) attributes {dimension_semantics = [#tpu.dimension_semantics<parallel>], iteration_bounds = array<i64: 1>, scalar_prefetch = 0 : i64, scratch_operands = 0 : i64, tpu.core_type = #tpu.core_type<tc>, window_params = [{transform_indices = @transform_0, window_bounds = array<i64: 8, 32>}, {pipeline_mode = #tpu.pipeline_mode<synchronous>, transform_indices = @transform_1, window_bounds = array<i64: 32, 128>}, {pipeline_mode = #tpu.pipeline_mode<synchronous>, transform_indices = @transform_2, window_bounds = array<i64: 1, 128>}, {pipeline_mode = #tpu.pipeline_mode<synchronous>, transform_indices = @transform_3, window_bounds = array<i64: 128, 128>}, {pipeline_mode = #tpu.pipeline_mode<synchronous>, transform_indices = @transform_4, window_bounds = array<i64: 1, 128>}, {transform_indices = @transform_5, window_bounds = array<i64: 8, 3>}]} {
    %c0 = arith.constant 0 : index
    %c0_0 = arith.constant 0 : index
    %0 = vector.load %arg1[%c0, %c0_0] : memref<8x32xf32, #tpu.memory_space<vmem>>, vector<8x32xf32>
    %c0_1 = arith.constant 0 : index
    %c0_2 = arith.constant 0 : index
    %1 = vector.load %arg2[%c0_1, %c0_2] : memref<32x128xf32, #tpu.memory_space<vmem>>, vector<32x128xf32>
    %cst = arith.constant dense<0.000000e+00> : vector<8x128xf32>
    %2 = tpu.matmul %0, %1, %cst {dimension_numbers = #tpu.dot_dimension_numbers<[1], [0], [0], [1], [0, 0, 1, 1], [], []>} : vector<8x32xf32>, vector<32x128xf32>, vector<8x128xf32> -> vector<8x128xf32>
    %c0_3 = arith.constant 0 : index
    %c0_4 = arith.constant 0 : index
    %3 = vector.load %arg3[%c0_3, %c0_4] : memref<1x128xf32, #tpu.memory_space<vmem>>, vector<1x128xf32>
    %4 = vector.broadcast %3 : vector<1x128xf32> to vector<8x128xf32>
    %5 = arith.addf %2, %4 : vector<8x128xf32>
    %cst_5 = arith.constant 0.000000e+00 : f32
    %6 = vector.broadcast %cst_5 : f32 to vector<8x128xf32>
    %7 = arith.maximumf %5, %6 : vector<8x128xf32>
    %c0_6 = arith.constant 0 : index
    %c0_7 = arith.constant 0 : index
    %8 = vector.load %arg4[%c0_6, %c0_7] : memref<128x128xf32, #tpu.memory_space<vmem>>, vector<128x128xf32>
    %cst_8 = arith.constant dense<0.000000e+00> : vector<8x128xf32>
    %9 = tpu.matmul %7, %8, %cst_8 {dimension_numbers = #tpu.dot_dimension_numbers<[1], [0], [0], [1], [0, 0, 1, 1], [], []>} : vector<8x128xf32>, vector<128x128xf32>, vector<8x128xf32> -> vector<8x128xf32>
    %c0_9 = arith.constant 0 : index
    %c0_10 = arith.constant 0 : index
    %10 = vector.load %arg5[%c0_9, %c0_10] : memref<1x128xf32, #tpu.memory_space<vmem>>, vector<1x128xf32>
    %11 = vector.broadcast %10 : vector<1x128xf32> to vector<8x128xf32>
    %12 = arith.addf %9, %11 : vector<8x128xf32>
    %13 = vector.extract_strided_slice %12 {offsets = [0, 0], sizes = [8, 3], strides = [1, 1]} : vector<8x128xf32> to vector<8x3xf32>
    %c0_11 = arith.constant 0 : index
    %c0_12 = arith.constant 0 : index
    %14 = vector.load %arg6[%c0_11, %c0_12] : memref<8x3xf32, #tpu.memory_space<vmem>>, vector<8x3xf32>
    tpu.vector_store %arg6[%c0_11, %c0_12], %13 {strides = array<i32>} : memref<8x3xf32, #tpu.memory_space<vmem>>, vector<8x3xf32>,
    return
  }
  func.func @transform_0(%arg0: i32) -> (i32, i32) {
    %c0_i32 = arith.constant 0 : i32
    %c0_i32_0 = arith.constant 0 : i32
    return %arg0, %c0_i32 : i32, i32
  }
  func.func @transform_1(%arg0: i32) -> (i32, i32) {
    %c0_i32 = arith.constant 0 : i32
    %c0_i32_0 = arith.constant 0 : i32
    %c0_i32_1 = arith.constant 0 : i32
    return %c0_i32, %c0_i32_0 : i32, i32
  }
  func.func @transform_2(%arg0: i32) -> (i32, i32) {
    %c0_i32 = arith.constant 0 : i32
    %c0_i32_0 = arith.constant 0 : i32
    %c0_i32_1 = arith.constant 0 : i32
    return %c0_i32, %c0_i32_0 : i32, i32
  }
  func.func @transform_3(%arg0: i32) -> (i32, i32) {
    %c0_i32 = arith.constant 0 : i32
    %c0_i32_0 = arith.constant 0 : i32
    %c0_i32_1 = arith.constant 0 : i32
    return %c0_i32, %c0_i32_0 : i32, i32
  }
  func.func @transform_4(%arg0: i32) -> (i32, i32) {
    %c0_i32 = arith.constant 0 : i32
    %c0_i32_0 = arith.constant 0 : i32
    %c0_i32_1 = arith.constant 0 : i32
    return %c0_i32, %c0_i32_0 : i32, i32
  }
  func.func @transform_5(%arg0: i32) -> (i32, i32) {
    %c0_i32 = arith.constant 0 : i32
    %c0_i32_0 = arith.constant 0 : i32
    return %arg0, %c0_i32 : i32, i32
  }
}

</mosaic_0001>

<bundles_post_ra>
// kernel: tpu_custom_call.1
= control target key start
LH: loop header
LB: loop body
LE: loop exit
PB: predicated region body
PF: predicated region fallthrough
CT: control target
= control target key end

     0   :  { %10 = vsyncpa [#allocation3], 0  ;;  %s284_s0 = inlined_call_operand.hbm [shape: f32[8,32], index: 0, kind: input, shape index: {}]   ;;  %s285_s1 = inlined_call_operand.hbm [shape: f32[32,128], index: 1, kind: input, shape index: {}]   ;;  %s286_s2 = inlined_call_operand.vmem [shape: f32[1,128], index: 2, kind: input, shape index: {}]   ;;  %s287_s3 = inlined_call_operand.hbm [shape: f32[128,128], index: 3, kind: input, shape index: {}]   ;;  %s288_s4 = inlined_call_operand.vmem [shape: f32[1,128], index: 4, kind: input, shape index: {}]   ;;  %s289_s5 = inlined_call_operand.vmem [shape: f32[8,3], index: 5, kind: output, shape index: {}]  }
   0x1   :  { %11 = vsyncpa [#allocation5], 0  ;;  %s27_s20 = sshll.u32 %s285_s1, 4  ;;  %s231_s21 = smov [#allocation4]   ;;  %s28_s20 = int_to_ptr.hbm [resolvable:$true] %s27_s20 }
   0x2   :  { %s29_s22 = sshll.u32 %s231_s21, 4  ;;  %s17_s25 = sshll.u32 %s284_s0, 4  ;;  %s30_s22 = int_to_ptr.vmem [resolvable:$true] %s29_s22  ;;  %s18_s25 = int_to_ptr.hbm [resolvable:$true] %s17_s25 }
   0x3   :  { %s232_s26 = smov 128   ;;  %s233_s27 = smov 8  }
   0x4   :  { %35 = dma.hbm_to_vmem [thread:$0]  %s28_s20, 512, %s30_s22, [#allocation5], %s232_s26, %s232_s26, %s233_s27  }
   0x5   :  { %s234_s28 = smov [#allocation2]   ;;  %s42_s7 = sshll.u32 %s287_s3, 4  ;;  %s43_s7 = int_to_ptr.hbm [resolvable:$true] %s42_s7 }
   0x6   :  { %s19_s29 = sshll.u32 %s234_s28, 4  ;;  %s235_s1 = smov [#allocation6]   ;;  %s20_s29 = int_to_ptr.vmem [resolvable:$true] %s19_s29 }
   0x7   :  { %22 = dma.hbm_to_vmem [thread:$0]  %s18_s25, 128, %s20_s29, [#allocation3]  }
   0x8   :  { %s44_s8 = sshll.u32 %s235_s1, 4  ;;  %s45_s8 = int_to_ptr.vmem [resolvable:$true] %s44_s8 }
   0x9   :  { %50 = dma.hbm_to_vmem [thread:$0]  %s43_s7, 2048, %s45_s8, [#allocation5], %s232_s26, %s232_s26, %s233_s27  }
   0xa   :  { %227 = dma.done.wait [#allocation3], 128  }
   0xb   :  { %228 = vsyncadd [#allocation3], 4294967168 }
   0xc   :  { %229 = dma.done.wait [#allocation5], 2560  }
   0xd   :  { %230 = vsyncadd [#allocation5], 4294964736  ;;  %v69_v0 = vld [vmem:[#allocation4 + $0x18] sm:$0xff]  ;;  %v68_v1 = vld [vmem:[#allocation4 + $0x10] sm:$0xff]  ;;  %vm74_vm0 = vcmask 261120   ;;  %vm139_vm1 = vcmask 23552  }
   0xe   :  { %90 = vmatpush.msra.mxu0 %v69_v0  ;;  %v114_v2 = vld [vmem:[#allocation6 + $0x78] sm:$0xff]  ;;  %v67_v3 = vld [vmem:[#allocation4 + $0x8] sm:$0xff]  ;;  %v113_v4 = vld [vmem:[#allocation6 + $0x70] sm:$0xff] }
   0xf   :  { %119 = vmatpush.msra.mxu1 %v114_v2  ;;  %v112_v5 = vld [vmem:[#allocation6 + $0x68] sm:$0xff]  ;;  %v66_v6 = vld [vmem:[#allocation4] sm:$0xff]  ;;  %v65_v7 = vld [vmem:[#allocation2] sm:$0xff] }
  0x10   :  { %91 = vmatpush.msra.mxu0 %v68_v1  ;;  %v111_v8 = vld [vmem:[#allocation6 + $0x60] sm:$0xff]  ;;  %v110_v9 = vld [vmem:[#allocation6 + $0x58] sm:$0xff]  ;;  %v109_v10 = vld [vmem:[#allocation6 + $0x50] sm:$0xff] }
  0x11   :  { %120 = vmatpush.msra.mxu1 %v113_v4  ;;  %v108_v11 = vld [vmem:[#allocation6 + $0x48] sm:$0xff]  ;;  %v107_v12 = vld [vmem:[#allocation6 + $0x40] sm:$0xff]  ;;  %v106_v13 = vld [vmem:[#allocation6 + $0x38] sm:$0xff] }
  0x12   :  { %92 = vmatpush.msra.mxu0 %v67_v3  ;;  %v105_v14 = vld [vmem:[#allocation6 + $0x30] sm:$0xff]  ;;  %v104_v15 = vld [vmem:[#allocation6 + $0x28] sm:$0xff]  ;;  %v103_v16 = vld [vmem:[#allocation6 + $0x20] sm:$0xff] }
  0x13   :  { %121 = vmatpush.msra.mxu1 %v112_v5  ;;  %v102_v17 = vld [vmem:[#allocation6 + $0x18] sm:$0xff]  ;;  %v101_v18 = vld [vmem:[#allocation6 + $0x10] sm:$0xff]  ;;  %v100_v19 = vld [vmem:[#allocation6 + $0x8] sm:$0xff] }
  0x14   :  { %93 = vmatpush.msra.mxu0 %v66_v6  ;;  %v99_v20 = vld [vmem:[#allocation6] sm:$0xff]  ;;  %v153_v21 = vld [vmem:[%s286_s2] ss:$0 sm:$0xff] }
  0x15   :  { %147 = vmatmul.msk.f32.vlgmr.msra.gmra.mxu0 %vm74_vm0, %v65_v7  ;;  %122 = vmatpush.msra.mxu1 %v111_v8  ;;  %v154_v25 = vld [vmem:[%s288_s4] ss:$0 sm:$0xff] }
  0x17   :  { %123 = vmatpush.msra.mxu1 %v110_v9 }
  0x19   :  { %124 = vmatpush.msra.mxu1 %v109_v10 }
  0x1b   :  { %125 = vmatpush.msra.mxu1 %v108_v11 }
  0x1d   :  { %126 = vmatpush.msra.mxu1 %v107_v12 }
  0x1f   :  { %127 = vmatpush.msra.mxu1 %v106_v13 }
  0x21   :  { %128 = vmatpush.msra.mxu1 %v105_v14 }
  0x23   :  { %129 = vmatpush.msra.mxu1 %v104_v15 }
  0x25   :  { %130 = vmatpush.msra.mxu1 %v103_v16 }
  0x27   :  { %131 = vmatpush.msra.mxu1 %v102_v17 }
  0x29   :  { %132 = vmatpush.msra.mxu1 %v101_v18 }
  0x2b   :  { %133 = vmatpush.msra.mxu1 %v100_v19 }
  0x2d   :  { %134 = vmatpush.msra.mxu1 %v99_v20 }
  0x92   :  { %v95_v22 = vpop.f32.mrf.mxu0 }
  0x93   :  { %v96_v23 = vadd.f32 %v153_v21, %v95_v22 }
  0x95   :  { %v98_v24 = vmax.f32 %v96_v23, 0.0 }
  0x97   :  { %135 = vmatmul.f32.vlgmr.msra.gmra.mxu1 %v98_v24 }
 0x114   :  { %v136_v26 = vpop.f32.mrf.mxu1 }
 0x115   :  { %v137_v27 = vadd.f32 %v154_v25, %v136_v26 }
 0x117   :  { %140 = vst.msk [vmem:[%s289_s5] sm:$0xff] %vm139_vm1, %v137_v27 }
 0x118   :  { %145 = vsyncpa [#allocation3], 1 }
 0x119   :  { %146 = vsyncpa [#allocation5], 1 }

</bundles_post_ra>
